<compile_context>
chip_gen: v7x
topology: tpu7x:2x2x1
jax: 0.10.0
libtpu: 0.0.40
codegen_flags: <defaults>
</compile_context>

<pallas_src>
import math

import numpy as np

import jax
import jax.numpy as jnp
from jax.experimental import pallas as pl
from jax.experimental.pallas import tpu as pltpu


# --------------------------------------------------------------------------
# Trace-time (host) construction of the one-hot selection matrix.
# --------------------------------------------------------------------------
def _build_selection_matrix(H, W, angle_deg):
    """sel[s, o] = 1 iff flat source pixel s feeds flat output pixel o (bf16)."""
    a = math.radians(angle_deg)
    cos_a = np.float32(math.cos(a))
    sin_a = np.float32(math.sin(a))
    cx = np.float32((W - 1) / 2.0)
    cy = np.float32((H - 1) / 2.0)

    jj, ii = np.meshgrid(np.arange(W, dtype=np.float32),
                         np.arange(H, dtype=np.float32))
    xc = jj - cx
    yc = ii - cy
    # Inverse rotation back to source coords (float32 to match the reference).
    x_src = xc * cos_a - yc * sin_a + cx
    y_src = xc * sin_a + yc * cos_a + cy
    # Nearest neighbour, round-half-to-even (same as jnp.round).
    xn = np.rint(x_src).astype(np.int32)
    yn = np.rint(y_src).astype(np.int32)
    inb = (xn >= 0) & (xn < W) & (yn >= 0) & (yn < H)
    src = np.where(inb, yn * W + xn, -1).reshape(-1)          # (HW,)

    HW = H * W
    sel = np.zeros((HW, HW), dtype=np.float32)                # sel[source, output]
    out_idx = np.arange(HW)
    valid = src >= 0
    sel[src[valid], out_idx[valid]] = 1.0                     # fill=0 outside frame
    return jnp.asarray(sel, dtype=jnp.bfloat16)


# --------------------------------------------------------------------------
# Generation-aware VMEM capacity query.
# --------------------------------------------------------------------------
def _vmem_capacity_bytes():
    try:
        cap = getattr(pltpu.get_tpu_info(), "vmem_capacity_bytes", None)
        if cap:
            return int(cap)
    except Exception:
        pass
    return 64 << 20   # conservative default (v7x per-TensorCore VMEM)


# --------------------------------------------------------------------------
# Tiling choice: lane-dense column tiles, MXU-friendly row tiles, VMEM-aware.
# --------------------------------------------------------------------------
def _choose_tiling(NC, HW, budget_bytes, tn_cap):
    # --- Row tile (MXU M dim): bias toward the MXU height when NC allows,
    # otherwise the largest multiple of 8 dividing NC (or NC itself).
    if NC % 256 == 0:
        TM = 256
    elif NC % 128 == 0:
        TM = 128
    elif NC % 8 == 0:
        TM = max(t for t in range(8, min(NC, 256) + 1, 8) if NC % t == 0)
    else:
        TM = NC                                   # full second-minor dim is legal
    # Shrink TM if the double-buffered full-K row slab would blow the budget.
    while TM > 8 and NC % TM == 0 and 2 * TM * HW * 4 > budget_bytes // 2:
        smaller = [t for t in range(8, TM, 8) if NC % t == 0]
        if not smaller:
            break
        TM = smaller[-1]

    # --- Column tile (lane dim): multiples of 128 dividing HW; pick the
    # largest fitting the double-buffered budget, preferring >=2 column tiles
    # so v7x's two TensorCores both get work and DMA/compute overlap exists.
    if HW % 128 != 0:
        return TM, HW                             # fall back: full-row tile
    cands = [t for t in range(128, min(HW, tn_cap) + 1, 128) if HW % t == 0]

    def vmem_need(tn):
        # 2x img row-slab (f32) + 2x sel column-slab (bf16) + 2x out tile (f32)
        return 2 * TM * HW * 4 + 2 * HW * tn * 2 + 2 * TM * tn * 4

    fitting = [t for t in cands if vmem_need(t) <= budget_bytes] or [cands[0]]
    multi = [t for t in fitting if HW // t >= 2]
    TN = max(multi) if multi else max(fitting)
    return TM, TN


# --------------------------------------------------------------------------
# Kernel: exact f32 gather via three native bf16 MXU passes (hi/mid/lo split).
# --------------------------------------------------------------------------
def _rotate_gather_kernel(img_ref, sel_ref, out_ref):
    x = img_ref[...]                              # (TM, HW) f32
    sel = sel_ref[...]                            # (HW, TN) bf16, one-hot columns

    hi = x.astype(jnp.bfloat16)                   # top 8 mantissa bits
    r1 = x - hi.astype(jnp.float32)
    mid = r1.astype(jnp.bfloat16)                 # next 8 bits
    lo = (r1 - mid.astype(jnp.float32)).astype(jnp.bfloat16)   # last 8 bits (exact)

    acc = jnp.dot(hi, sel, preferred_element_type=jnp.float32)
    acc = acc + jnp.dot(mid, sel, preferred_element_type=jnp.float32)
    acc = acc + jnp.dot(lo, sel, preferred_element_type=jnp.float32)
    out_ref[...] = acc.astype(out_ref.dtype)


def rotate_pallas(img, angle_deg):
    """img: (N, C, H, W) float32 (NCHW). Returns rotated image, same shape."""
    N, C, H, W = img.shape
    NC, HW = N * C, H * W
    img_flat = img.reshape(NC, HW).astype(jnp.float32)

    sel = _build_selection_matrix(H, W, angle_deg)             # (HW, HW) bf16

    vmem_cap = _vmem_capacity_bytes()
    small_vmem = vmem_cap <= (64 << 20)                        # v7x per-TC
    budget = (24 << 20) if small_vmem else (48 << 20)
    tn_cap = 4096 if small_vmem else 8192

    TM, TN = _choose_tiling(NC, HW, budget, tn_cap)
    assert NC % TM == 0, f"TM={TM} must divide NC={NC}"
    assert HW % TN == 0, f"TN={TN} must divide HW={HW}"
    grid_n, grid_m = HW // TN, NC // TM
    # Outer axis = column tiles (n): the sel slab's block index depends only on
    # n, so each HWxTN slab is DMAed from HBM exactly once.
    grid = (grid_n, grid_m)

    vmem_need = 2 * TM * HW * 4 + 2 * HW * TN * 2 + 2 * TM * TN * 4
    vmem_limit = int(min(max(vmem_need + (8 << 20), 16 << 20),
                         vmem_cap - (16 << 20)))

    cost = pl.CostEstimate(
        flops=3 * 2 * NC * HW * HW,                # three bf16 passes
        transcendentals=0,
        bytes_accessed=int(HW * HW * 2             # sel: single pass
                           + grid_n * NC * HW * 4  # img re-read per column tile
                           + NC * HW * 4),         # output
    )

    out_flat = pl.pallas_call(
        _rotate_gather_kernel,
        out_shape=jax.ShapeDtypeStruct((NC, HW), jnp.float32),
        grid_spec=pltpu.PrefetchScalarGridSpec(
            num_scalar_prefetch=0,
            grid=grid,
            in_specs=[
                # Full-K row slab of the image for this row tile (inner axis).
                pl.BlockSpec((TM, HW), lambda n, m: (m, 0)),
                # Column slab of the static selection matrix (outer axis only
                # -> fetched once per n, reused across all row tiles).
                pl.BlockSpec((HW, TN), lambda n, m: (0, n)),
            ],
            out_specs=pl.BlockSpec((TM, TN), lambda n, m: (m, n)),
        ),
        compiler_params=pltpu.CompilerParams(
            dimension_semantics=("parallel", "parallel"),
            vmem_limit_bytes=vmem_limit,
        ),
        cost_estimate=cost,
    )(img_flat, sel)

    return out_flat.reshape(N, C, H, W)


# --------------------------------------------------------------------------
# Pure-JAX reference of the same nearest-neighbour rotation.
# --------------------------------------------------------------------------
def rotate_reference(img, angle_deg):
    N, C, H, W = img.shape
    a = math.radians(angle_deg)
    cos_a, sin_a = math.cos(a), math.sin(a)
    cx, cy = (W - 1) / 2.0, (H - 1) / 2.0
    jj, ii = jnp.meshgrid(jnp.arange(W), jnp.arange(H))
    xc = jj.astype(jnp.float32) - cx
    yc = ii.astype(jnp.float32) - cy
    xn = jnp.round(xc * cos_a - yc * sin_a + cx).astype(jnp.int32)
    yn = jnp.round(xc * sin_a + yc * cos_a + cy).astype(jnp.int32)
    inb = (xn >= 0) & (xn < W) & (yn >= 0) & (yn < H)
    src = jnp.where(inb, yn * W + xn, 0).reshape(-1)
    flat = img.reshape(N * C, H * W)
    gathered = jnp.take(flat, src, axis=1)
    gathered = jnp.where(inb.reshape(1, -1), gathered, 0.0)
    return gathered.reshape(N, C, H, W)


if __name__ == "__main__":
    # Deterministic "parameter": M is the (synthetic) augmentation level index.
    M = 5
    angle = 359.0 / 16.0 * M  # matches Rotate.__init__

    key = jax.random.PRNGKey(0)
    N, C, H, W = 2, 4, 16, 16
    img = jax.random.uniform(key, (N, C, H, W), dtype=jnp.float32)

    out = rotate_pallas(img, angle)
    out = jax.block_until_ready(out)

    ref = rotate_reference(img, angle)
    assert out.shape == (N, C, H, W)
    # hi/mid/lo bf16 split + one-hot sel is exact for normal f32 inputs.
    assert jnp.allclose(out, ref, atol=1e-6), "mismatch vs reference rotation"

    print("KERNEL_OK")
</pallas_src>

<mosaic_0001>
module attributes {stable_mosaic.version = 11 : i64} {
  func.func @_rotate_gather_kernel(%arg0: i32, %arg1: i32, %arg2: memref<8x256xf32, #tpu.memory_space<vmem>>, %arg3: memref<256x128xbf16, #tpu.memory_space<vmem>>, %arg4: memref<8x128xf32, #tpu.memory_space<vmem>>) attributes {dimension_semantics = [#tpu.dimension_semantics<parallel>, #tpu.dimension_semantics<parallel>], iteration_bounds = array<i64: 2, 1>, scalar_prefetch = 0 : i64, scratch_operands = 0 : i64, tpu.core_type = #tpu.core_type<tc>, window_params = [{transform_indices = @transform_0, window_bounds = array<i64: 8, 256>}, {transform_indices = @transform_1, window_bounds = array<i64: 256, 128>}, {transform_indices = @transform_2, window_bounds = array<i64: 8, 128>}]} {
    %c0 = arith.constant 0 : index
    %c0_0 = arith.constant 0 : index
    %0 = vector.load %arg2[%c0, %c0_0] : memref<8x256xf32, #tpu.memory_space<vmem>>, vector<8x256xf32>
    %c0_1 = arith.constant 0 : index
    %c0_2 = arith.constant 0 : index
    %1 = vector.load %arg3[%c0_1, %c0_2] : memref<256x128xbf16, #tpu.memory_space<vmem>>, vector<256x128xbf16>
    %2 = arith.truncf %0 : vector<8x256xf32> to vector<8x256xbf16>
    %3 = arith.extf %2 : vector<8x256xbf16> to vector<8x256xf32>
    %4 = arith.subf %0, %3 : vector<8x256xf32>
    %5 = arith.truncf %4 : vector<8x256xf32> to vector<8x256xbf16>
    %6 = arith.extf %5 : vector<8x256xbf16> to vector<8x256xf32>
    %7 = arith.subf %4, %6 : vector<8x256xf32>
    %8 = arith.truncf %7 : vector<8x256xf32> to vector<8x256xbf16>
    %cst = arith.constant dense<0.000000e+00> : vector<8x128xf32>
    %9 = tpu.matmul %2, %1, %cst {dimension_numbers = #tpu.dot_dimension_numbers<[1], [0], [0], [1], [0, 0, 1, 1], [], []>} : vector<8x256xbf16>, vector<256x128xbf16>, vector<8x128xf32> -> vector<8x128xf32>
    %cst_3 = arith.constant dense<0.000000e+00> : vector<8x128xf32>
    %10 = tpu.matmul %5, %1, %cst_3 {dimension_numbers = #tpu.dot_dimension_numbers<[1], [0], [0], [1], [0, 0, 1, 1], [], []>} : vector<8x256xbf16>, vector<256x128xbf16>, vector<8x128xf32> -> vector<8x128xf32>
    %11 = arith.addf %9, %10 : vector<8x128xf32>
    %cst_4 = arith.constant dense<0.000000e+00> : vector<8x128xf32>
    %12 = tpu.matmul %8, %1, %cst_4 {dimension_numbers = #tpu.dot_dimension_numbers<[1], [0], [0], [1], [0, 0, 1, 1], [], []>} : vector<8x256xbf16>, vector<256x128xbf16>, vector<8x128xf32> -> vector<8x128xf32>
    %13 = arith.addf %11, %12 : vector<8x128xf32>
    %c0_5 = arith.constant 0 : index
    %c0_6 = arith.constant 0 : index
    %14 = vector.load %arg4[%c0_5, %c0_6] : memref<8x128xf32, #tpu.memory_space<vmem>>, vector<8x128xf32>
    tpu.vector_store %arg4[%c0_5, %c0_6], %13 {strides = array<i32>} : memref<8x128xf32, #tpu.memory_space<vmem>>, vector<8x128xf32>,
    return
  }
  func.func @transform_0(%arg0: i32, %arg1: i32) -> (i32, i32) {
    %c0_i32 = arith.constant 0 : i32
    %c0_i32_0 = arith.constant 0 : i32
    return %arg1, %c0_i32 : i32, i32
  }
  func.func @transform_1(%arg0: i32, %arg1: i32) -> (i32, i32) {
    %c0_i32 = arith.constant 0 : i32
    %c0_i32_0 = arith.constant 0 : i32
    return %c0_i32, %arg0 : i32, i32
  }
  func.func @transform_2(%arg0: i32, %arg1: i32) -> (i32, i32) {
    %c0_i32 = arith.constant 0 : i32
    return %arg1, %arg0 : i32, i32
  }
}

</mosaic_0001>

<bundles_post_ra>
// kernel: tpu_custom_call.1
= control target key start
LH: loop header
LB: loop body
LE: loop exit
PB: predicated region body
PF: predicated region fallthrough
CT: control target
= control target key end

     0   :  { %7 = vsyncpa [#allocation3], 0  ;;  %s1182_s0 = inlined_call_operand.hbm [shape: f32[8,256], index: 0, kind: input, shape index: {}]   ;;  %s1183_s1 = inlined_call_operand.hbm [shape: bf16[256,256], index: 1, kind: input, shape index: {}]   ;;  %s1184_s2 = inlined_call_operand.hbm [shape: f32[8,256], index: 2, kind: output, shape index: {}]  }
   0x1   :  { %8 = vsyncpa [#allocation6], 0 }
   0x2   :  { %10 = vsyncpa [#allocation6 + $0x1], 0 }
   0x3   :  { %11 = vsyncpa [#allocation4], 0 }
   0x4   :  { %13 = vsyncpa [#allocation4 + $0x1], 0  ;;  %s929_s9 = smov 0   ;;  %s931_s10 = smov 0  }
   0x5   :  { %s933_s11 = smov 0   ;;  %s935_s12 = smov 0  }
   0x6   :  { %s937_s13 = smov 0   ;;  %s939_s14 = smov 0  }
   0x7 LB: > { %s573_s15 = sadd.s32 4294967295, %s906_s14   ;;  %s574_s16 = sadd.s32 4294967294, %s906_s14   ;;  %s906_s14 = sphi %s939_s14, %s19_s14   ;;  %s902_s13 = sphi %s937_s13, %s1212_s13   ;;  %s898_s12 = sphi %s935_s12, %s1211_s12   ;;  %s894_s11 = sphi %s933_s11, %s1210_s11   ;;  %s890_s10 = sphi %s931_s10, %s1209_s10   ;;  %s886_s9 = sphi %s929_s9, %s1208_s9  }
   0x8   : > { %s64_s17 = sadd.s32 1, %s894_s11  ;;  %p71_p0 = scmp.ne.s32.totalorder %s894_s11, %s890_s10 }
   0x9   : > { %p72_p1 = scmp.eq.s32.totalorder %s906_s14, 0  ;;  %p77_p2 = scmp.ne.s32.totalorder %s890_s10, %s886_s9 }
   0xa   : > { %p967_p3 = scmp.eq.s32.totalorder %s573_s15, 0  ;;  %p103_p4 = scmp.eq.s32.totalorder %s573_s15, 1 }
   0xb   : > { %p971_p5 = por %p72_p1, %p71_p0  ;;  %p109_p6 = scmp.eq.s32.totalorder %s574_s16, 1 }
   0xc   : > { %s1191_s18 = scalar_select %p967_p3, 1, 0 }
   0xd   : > { %p977_p7 = por %p967_p3, %p77_p2  ;;  %p981_p8 = por %p103_p4, %p71_p0 }
   0xe   : > { %p985_p9 = por %p109_p6, %p77_p2  ;;  %p575_p10 = scmp.ge.s32.totalorder %s906_s14, 1 }
   0xf   : > { %s1193_s20 = scalar_select %p977_p7, 1, 0 }
  0x10   : > { %s1194_s21 = scalar_select %p981_p8, 1, 0 }
  0x11   : > { %s1195_s22 = scalar_select %p985_p9, 1, 0 }
  0x12   : > { %p116_p11 = scmp.lt.s32.totalorder %s906_s14, 3  ;;  %s908_s24 = smov [#allocation2]  }
  0x13   : > { %s132_s25 = sshll.u32 %s908_s24, 4  ;;  %p691_p1 = scmp.lt.s32.totalorder %s906_s14, 2  ;;  %s133_s25 = int_to_ptr.vmem [resolvable:$true] %s132_s25 }
  0x14   : > { %p992_p13 = pnand %p575_p10, %p116_p11  ;;  %s31_s28 = sadd.s32 1, %s902_s13 }
  0x15   : > { %p1001_p4 = pnand %p691_p1, %p971_p5  ;;  %p1012_p6 = scmp.ge.s32.totalorder %s31_s28, 2 }
  0x16   : > { %s1196_s23 = scalar_select %p992_p13, 1, 0 }
  0x17   : > { %p678_p0 = pneg %p992_p13  ;;  %s143_s30 = sand.u32 1, %s894_s11  }
  0x18   : > { %s1197_s26 = scalar_select %p1001_p4, 1, 0 }
  0x19   : > { %p1007_p2 = pnand %p678_p0, %p967_p3  ;;  %s762_s5 = scalar_lea.hbm %s1182_s0, 256 }
  0x1a   : > { %s1199_s29 = scalar_select %p1012_p6, 1, 0 }
  0x1b   : > { %p763_p5 = scmp.ne.s32.totalorder %s1182_s0, %s762_s5  ;;  %p764_p10 = pneg %p1007_p2 }
  0x1c   : > { %p769_p0 = scmp.lt.u32.totalorder %s762_s5, %s1182_s0 }
  0x1d   : > { %p765_p11 = pnand %p764_p10, %p763_p5 }
  0x1f   : > { %p766_p1 = pneg %p765_p11 }
  0x21   : > { %p771_p12 = pnand %p769_p0, %p766_p1 }
  0x23   : > { %774 = shalt.err (!%p771_p12)
}
  0x24   : > { %s775_s16 = scalar_lea.vmem %s133_s25, 256  ;;  %p783_p3 = scmp.lt.s32.totalorder %s133_s25, %s133_s25 }
  0x25   : > { %p776_p9 = scmp.ne.s32.totalorder %s133_s25, %s775_s16  ;;  %p784_p13 = scmp.lt.s32.totalorder %s775_s16, %s775_s16 }
  0x27   : > { %p778_p8 = pnand %p776_p9, %p764_p10  ;;  %p785_p4 = por %p784_p13, %p783_p3 }
  0x29   : > { %p779_p7 = pneg %p778_p8 }
  0x2b   : > { %p786_p6 = pnand %p785_p4, %p779_p7 }
  0x2d   : > { %789 = shalt.err (!%p786_p6)
}
  0x2e   : > { %681 = dma.hbm_to_vmem [thread:$0]  (!%p1007_p2), %s1182_s0, 256, %s133_s25, [#allocation3]  }
  0x2f   : > { %p1200_p9 = scmp.ne.s32.totalorder %s1199_s29, 0  ;;  %s578_s3 = sshll.u32 %s143_s30, 7 }
  0x30   : > { %s579_s5 = sshll.u32 %s902_s13, 6  ;;  %s147_s8 = scalar_lea.vmem [#allocation5], %s578_s3 }
  0x31   : > { %s1214_s28 = smov (%p1200_p9, %s31_s28), 0  ;;  %s1043_s7 = scalar_lea.hbm %s1183_s1, %s579_s5 }
  0x32   : > { %s61_s4 = ssub.s32 %s902_s13, %s1214_s28  ;;  %s153_s15 = sshll.u32 %s147_s8, 4  ;;  %s1050_s15 = int_to_ptr.vmem [resolvable:$true] %s153_s15 }
  0x33   : > { %p62_p3 = scmp.eq.s32.totalorder %s61_s4, 0  ;;  %s1052_s29 = scalar_lea.sflag [#allocation6], %s143_s30 }
  0x34   : > { %s790_s16 = scalar_lea.hbm %s1043_s7, 2048  ;;  %p1201_p8 = scmp.ne.s32.totalorder %s1197_s26, 0 }
  0x35   : > { %s1048_s25 = scalar_select %p62_p3, %s894_s11, %s64_s17  }
  0x36   : > { %p791_p7 = scmp.ne.s32.totalorder %s1043_s7, %s790_s16  ;;  %p792_p12 = pneg %p1201_p8 }
  0x37   : > { %s795_s3 = scalar_lea.hbm %s1183_s1, 4096  ;;  %p796_p2 = scmp.lt.u32.totalorder %s1043_s7, %s1183_s1 }
  0x38   : > { %p793_p13 = pnand %p792_p12, %p791_p7  ;;  %p797_p6 = scmp.lt.u32.totalorder %s795_s3, %s790_s16 }
  0x39   : > { %p799_p10 = scmp.lt.u32.totalorder %s790_s16, %s1043_s7 }
  0x3a   : > { %p794_p4 = pneg %p793_p13  ;;  %p798_p5 = por %p797_p6, %p796_p2 }
  0x3c   : > { %p800_p11 = por %p799_p10, %p798_p5 }
  0x3e   : > { %p801_p1 = pnand %p800_p11, %p794_p4 }
  0x40   : > { %804 = shalt.err (!%p801_p1)
}
  0x41   : > { %s805_s17 = scalar_lea.vmem %s1050_s15, 2048  ;;  %s909_s30 = smov [#allocation5]  }
  0x42   : > { %p806_p0 = scmp.ne.s32.totalorder %s1050_s15, %s805_s17  ;;  %s810_s27 = sshll.u32 %s909_s30, 4  ;;  %s811_s27 = int_to_ptr.vmem [resolvable:$false] %s810_s27 }
  0x43   : > { %s812_s6 = scalar_lea.vmem %s811_s27, 4096  ;;  %p813_p7 = scmp.lt.s32.totalorder %s1050_s15, %s811_s27 }
  0x44   : > { %p808_p9 = pnand %p806_p0, %p792_p12  ;;  %p814_p13 = scmp.lt.s32.totalorder %s812_s6, %s805_s17 }
  0x46   : > { %p809_p3 = pneg %p808_p9  ;;  %p815_p2 = por %p814_p13, %p813_p7 }
  0x48   : > { %p816_p6 = pnand %p815_p2, %p809_p3 }
  0x4a   : > { %819 = shalt.err (!%p816_p6)
}
  0x4b   : > { %s910_s8 = smov 128   ;;  %s911_s16 = smov 64  }
  0x4c   : > { %s912_s19 = smov 4   ;;  %p1202_p12 = scmp.ne.s32.totalorder %s1196_s23, 0 }
  0x4d   : > { %685 = dma.hbm_to_vmem [thread:$0]  (!%p1201_p8), %s1043_s7, 2048, %s1050_s15, %s1052_s29, %s910_s8, %s911_s16, %s912_s19  }
  0x4e   : > { %165 = sbr.rel (%p1202_p12) target bundleno = 386 (0x182), region = 28  ;;  %p1203_p4 = scmp.ne.s32.totalorder (!%p1202_p12), %s1191_s18, 0 }
  0x55   : > { %873 = dma.done.wait (%p1203_p4), [#allocation3], 256  }
  0x56   : > { %875 = vsyncadd (%p1203_p4), [#allocation3], 4294967040  ;;  %s1087_s24 = sand.u32 1, %s890_s10   ;;  %p1204_p8 = scmp.ne.s32.totalorder %s1193_s20, 0 }
  0x57   : > { %s582_s3 = sshll.u32 %s1087_s24, 7  ;;  %s172_s4 = scalar_lea.sflag [#allocation6], %s1087_s24 }
  0x58   : > { %s1091_s5 = scalar_lea.vmem [#allocation5], %s582_s3 }
  0x59   : > { %877 = dma.done.wait (%p1204_p8), %s172_s4, 2048  }
  0x5a   : > { %879 = vsyncadd (%p1204_p8), %s172_s4, 4294965248  ;;  %v1098_v0 = vld [vmem:[%s1091_s5 + $0x40] sm:$0xff]   ;;  %v1106_v2 = vld [vmem:[%s1091_s5 + $0x48] sm:$0xff]   ;;  %s583_s18 = sshll.u32 %s1087_s24, 3  ;;  %s601_s20 = sshll.u32 %s898_s12, 7 }
  0x5b   : > { %v1101_v1 = vld [vmem:[%s1091_s5] sm:$0xff]   ;;  %604 = vmatprep.subr.bf16.mxu0 %v1098_v0  ;;  %626 = vmatprep.subr.bf16.mxu1 %v1098_v0  ;;  %v749_v3 = vld [vmem:[%s1091_s5 + $0x8] sm:$0xff]   ;;  %v750_v4 = vld [vmem:[%s1091_s5 + $0x50] sm:$0xff]   ;;  %s195_s23 = scalar_lea.vmem [#allocation7], %s583_s18  ;;  %s1133_s29 = scalar_lea.hbm %s1184_s2, %s601_s20 }
  0x5c   : > { %605 = vmatpush3.bf16.msra.mxu0 %v1101_v1  ;;  %627 = vmatpush3.bf16.msra.mxu1 %v1101_v1  ;;  %v751_v5 = vld [vmem:[%s1091_s5 + $0x10] sm:$0xff]   ;;  %v752_v6 = vld [vmem:[%s1091_s5 + $0x58] sm:$0xff]   ;;  %v754_v8 = vld [vmem:[%s1091_s5 + $0x60] sm:$0xff]   ;;  %s479_s26 = sshll.u32 %s195_s23, 4  ;;  %s464_s17 = scalar_lea.sflag [#allocation4], %s1087_s24  ;;  %s1135_s26 = int_to_ptr.vmem [resolvable:$true] %s479_s26 }
  0x5d   : > { %606 = vmatprep.subr.bf16.mxu0 %v1106_v2  ;;  %628 = vmatprep.subr.bf16.mxu1 %v1106_v2  ;;  %v753_v7 = vld [vmem:[%s1091_s5 + $0x18] sm:$0xff]   ;;  %v755_v9 = vld [vmem:[%s1091_s5 + $0x20] sm:$0xff]   ;;  %v756_v10 = vld [vmem:[%s1091_s5 + $0x68] sm:$0xff]   ;;  %s820_s30 = scalar_lea.vmem %s1135_s26, 128  ;;  %p1205_p10 = scmp.ne.s32.totalorder %s1194_s21, 0 }
  0x5e   : > { %v198_v11 = vld [vmem:[#allocation2 + $0x8] sm:$0xff]  ;;  %v197_v12 = vld [vmem:[#allocation2] sm:$0xff]  ;;  %v757_v15 = vld [vmem:[%s1091_s5 + $0x28] sm:$0xff]   ;;  %p821_p5 = scmp.ne.s32.totalorder %s1135_s26, %s820_s30  ;;  %s913_s12 = smov [#allocation7]  }
  0x5f   : > { %v232_v13 = vpack.c.bf16 %v198_v11, %v198_v11  ;;  %v231_v14 = vpack.c.bf16 %v197_v12, %v197_v12  ;;  %v758_v17 = vld [vmem:[%s1091_s5 + $0x70] sm:$0xff]   ;;  %v760_v22 = vld [vmem:[%s1091_s5 + $0x78] sm:$0xff]   ;;  %s824_s27 = sshll.u32 %s913_s12, 4  ;;  %s825_s27 = int_to_ptr.vmem [resolvable:$false] %s824_s27 }
  0x60   : > { %607 = vmatpush3.bf16.msra.mxu0 %v749_v3  ;;  %629 = vmatpush3.bf16.msra.mxu1 %v749_v3  ;;  %v759_v20 = vld [vmem:[%s1091_s5 + $0x30] sm:$0xff]   ;;  %v761_v25 = vld [vmem:[%s1091_s5 + $0x38] sm:$0xff]   ;;  %p822_p11 = pnand %p821_p5, %p1205_p10  ;;  %s826_s6 = scalar_lea.vmem %s825_s27, 256 }
  0x61   : > { %608 = vmatprep.subr.bf16.mxu0 %v750_v4  ;;  %630 = vmatprep.subr.bf16.mxu1 %v750_v4  ;;  %v234_v16 = vunpack.c.l.bf16 %v232_v13  ;;  %v233_v19 = vunpack.c.l.bf16 %v231_v14  ;;  %p827_p0 = scmp.lt.s32.totalorder %s1135_s26, %s825_s27  ;;  %p828_p9 = scmp.lt.s32.totalorder %s826_s6, %s820_s30 }
  0x62   : > { %413 = vmatprep.mubr.bf16.mxu1 %v232_v13  ;;  %p823_p1 = pneg %p822_p11 }
  0x63   : > { %v236_v18 = vsub.f32 %v198_v11, %v234_v16  ;;  %v235_v24 = vsub.f32 %v197_v12, %v233_v19  ;;  %p829_p3 = por %p828_p9, %p827_p0 }
  0x64   : > { %609 = vmatpush3.bf16.msra.mxu0 %v751_v5  ;;  %631 = vmatpush3.bf16.msra.mxu1 %v751_v5 }
  0x65   : > { %610 = vmatprep.subr.bf16.mxu0 %v752_v6  ;;  %632 = vmatprep.subr.bf16.mxu1 %v752_v6  ;;  %v238_v21 = vpack.c.bf16 %v236_v18, %v236_v18  ;;  %v237_v27 = vpack.c.bf16 %v235_v24, %v235_v24  ;;  %p830_p7 = pnand %p829_p3, %p823_p1 }
  0x67   : > { %v240_v23 = vunpack.c.l.bf16 %v238_v21  ;;  %373 = vmatprep.mubr.bf16.mxu0 %v238_v21  ;;  %v239_v29 = vunpack.c.l.bf16 %v237_v27 }
  0x68   : > { %611 = vmatpush3.bf16.msra.mxu0 %v753_v7  ;;  %633 = vmatpush3.bf16.msra.mxu1 %v753_v7 }
  0x69   : > { %612 = vmatprep.subr.bf16.mxu0 %v754_v8  ;;  %634 = vmatprep.subr.bf16.mxu1 %v754_v8  ;;  %v242_v26 = vsub.f32 %v236_v18, %v240_v23  ;;  %v241_v30 = vsub.f32 %v235_v24, %v239_v29 }
  0x6b   : > { %v244_v28 = vpack.c.bf16 %v242_v26, %v242_v26  ;;  %v243_v31 = vpack.c.bf16 %v241_v30, %v241_v30 }
  0x6c   : > { %613 = vmatpush3.bf16.msra.mxu0 %v755_v9  ;;  %635 = vmatpush3.bf16.msra.mxu1 %v755_v9 }
  0x6d   : > { %614 = vmatprep.subr.bf16.mxu0 %v756_v10  ;;  %636 = vmatprep.subr.bf16.mxu1 %v756_v10 }
  0x70   : > { %615 = vmatpush3.bf16.msra.mxu0 %v757_v15  ;;  %637 = vmatpush3.bf16.msra.mxu1 %v757_v15 }
  0x71   : > { %616 = vmatprep.subr.bf16.mxu0 %v758_v17  ;;  %638 = vmatprep.subr.bf16.mxu1 %v758_v17 }
  0x74   : > { %617 = vmatpush3.bf16.msra.mxu0 %v759_v20  ;;  %639 = vmatpush3.bf16.msra.mxu1 %v759_v20 }
  0x75   : > { %618 = vmatprep.subr.bf16.mxu0 %v760_v22  ;;  %640 = vmatprep.subr.bf16.mxu1 %v760_v22 }
  0x78   : > { %619 = vmatpush3.bf16.msra.mxu0 %v761_v25  ;;  %641 = vmatpush3.bf16.msra.mxu1 %v761_v25 }
  0x79   : > { %648 = vmatprep.subr.bf16.mxu0 %v1098_v0 }
  0x7b   : > { %374 = vmatmul.mubr.bf16.vlgmr.msra.gmra.mrb[0].mxu0 %v237_v27  ;;  %414 = vmatmul.mubr.bf16.vlgmr.msra.gmra.mrb[0].mxu1 %v231_v14 }
  0x7c   : > { %649 = vmatpush3.bf16.msra.mxu0 %v1101_v1  ;;  %453 = vmatprep.mubr.bf16.mxu0 %v244_v28 }
  0x7d   : > { %650 = vmatprep.subr.bf16.mxu0 %v1106_v2 }
  0x80   : > { %651 = vmatpush3.bf16.msra.mxu0 %v749_v3 }
  0x81   : > { %652 = vmatprep.subr.bf16.mxu0 %v750_v4 }
  0x84   : > { %653 = vmatpush3.bf16.msra.mxu0 %v751_v5 }
  0x85   : > { %654 = vmatprep.subr.bf16.mxu0 %v752_v6 }
  0x88   : > { %655 = vmatpush3.bf16.msra.mxu0 %v753_v7 }
  0x89   : > { %656 = vmatprep.subr.bf16.mxu0 %v754_v8 }
  0x8c   : > { %657 = vmatpush3.bf16.msra.mxu0 %v755_v9 }
  0x8d   : > { %658 = vmatprep.subr.bf16.mxu0 %v756_v10 }
  0x90   : > { %659 = vmatpush3.bf16.msra.mxu0 %v757_v15 }
  0x91   : > { %660 = vmatprep.subr.bf16.mxu0 %v758_v17 }
  0x94   : > { %661 = vmatpush3.bf16.msra.mxu0 %v759_v20 }
  0x95   : > { %662 = vmatprep.subr.bf16.mxu0 %v760_v22 }
  0x98   : > { %663 = vmatpush3.bf16.msra.mxu0 %v761_v25 }
  0x9b   : > { %454 = vmatmul.mubr.bf16.vlgmr.msra.gmra.mrb[4].mxu0 %v243_v31 }
 0x14e   : > { %v620_v32 = vpop.f32.mrb[0].mxu0  ;;  %v642_v33 = vpop.f32.mrb[0].mxu1 }
 0x14f   : > { %v621_v34 = vpop.f32.mrb[1].mxu0  ;;  %v643_v35 = vpop.f32.mrb[1].mxu1 }
 0x150   : > { %v622_v36 = vadd.f32 %v621_v34, %v620_v32  ;;  %v644_v37 = vadd.f32 %v643_v35, %v642_v33  ;;  %v623_v38 = vpop.f32.mrb[2].mxu0  ;;  %v645_v39 = vpop.f32.mrb[2].mxu1 }
 0x151   : > { %v624_v40 = vpop.f32.mrb[3].mxu0  ;;  %v646_v41 = vpop.f32.mrb[3].mxu1 }
 0x152   : > { %v416_v42 = vadd.f32 %v644_v37, %v622_v36 }
 0x16e   : > { %v664_v43 = vpop.f32.mrb[4].mxu0 }
 0x16f   : > { %v665_v44 = vpop.f32.mrb[5].mxu0 }
 0x170   : > { %v666_v45 = vadd.f32 %v665_v44, %v664_v43  ;;  %v667_v46 = vpop.f32.mrb[6].mxu0 }
 0x171   : > { %v668_v47 = vpop.f32.mrb[7].mxu0 }
 0x172   : > { %v461_v48 = vadd.f32 %v666_v45, %v416_v42 }
 0x174   : > { %462 = vst [vmem:[%s195_s23] sm:$0xff] %v461_v48 }
 0x175   : > { %833 = shalt.err (!%p830_p7)
}
 0x176   : > { %s834_s8 = scalar_lea.hbm %s1133_s29, 128  ;;  %s838_s24 = scalar_lea.hbm %s1184_s2, 256 }
 0x177   : > { %p835_p13 = scmp.ne.s32.totalorder %s1133_s29, %s834_s8  ;;  %p839_p12 = scmp.lt.u32.totalorder %s1133_s29, %s1184_s2 }
 0x178   : > { %p840_p4 = scmp.lt.u32.totalorder %s838_s24, %s834_s8  ;;  %p842_p5 = scmp.lt.u32.totalorder %s834_s8, %s1133_s29 }
 0x179   : > { %p836_p2 = pnand %p835_p13, %p1205_p10 }
 0x17a   : > { %p841_p8 = por %p840_p4, %p839_p12 }
 0x17b   : > { %p837_p6 = pneg %p836_p2 }
 0x17c   : > { %p843_p11 = por %p842_p5, %p841_p8 }
 0x17e   : > { %p844_p1 = pnand %p843_p11, %p837_p6 }
 0x180   : > { %847 = shalt.err (!%p844_p1)
}
 0x181   : > { %676 = dma.vmem_to_hbm [thread:$0]  (%p1205_p10), %s1135_s26, 128, %s1133_s29, %s464_s17  }
 0x182 PF: > { %s491_s5 = sand.u32 1, %s886_s9   ;;  %p1206_p0 = scmp.ne.s32.totalorder %s1195_s22, 0 }
 0x183   : > { %p1207_p9 = scmp.ge.s32.totalorder %s906_s14, 2  ;;  %s492_s18 = scalar_lea.sflag [#allocation4], %s491_s5 }
 0x185   : > { %p687_p3 = pnand %p1207_p9, %p1206_p0 }
 0x187   : > { %881 = dma.done.wait (!%p687_p3), %s492_s18, 128  }
 0x188   : > { %883 = vsyncadd (!%p687_p3), %s492_s18, 4294967168  ;;  %s19_s14 = sadd.s32 1, %s906_s14   ;;  %s1208_s9 = smov %s890_s10 }
 0x189   : > { %p16_p7 = scmp.ge.s32.totalorder %s19_s14, 4   ;;  %s1209_s10 = smov %s894_s11 }
 0x18a   : > { %s1210_s11 = smov %s1048_s25  ;;  %s1211_s12 = smov %s902_s13 }
 0x18b   : > { %s1212_s13 = smov %s1214_s28  ;;  %18 = sbr.rel (!%p16_p7) target bundleno = 7 (0x7), region = 79 }
 0x192   :  { %497 = vsyncpa [#allocation3], 1 }
 0x193   :  { %499 = vsyncpa [#allocation3 + $0x1], 1 }
 0x194   :  { %500 = vsyncpa [#allocation6], 1 }
 0x195   :  { %502 = vsyncpa [#allocation6 + $0x1], 1 }
 0x196   :  { %503 = vsyncpa [#allocation4], 1 }
 0x197   :  { %505 = vsyncpa [#allocation4 + $0x1], 1 }

</bundles_post_ra>
